<compile_context>
chip_gen: v7x
topology: tpu7x:2x2x1
jax: 0.10.0
libtpu: 0.0.40
codegen_flags: <defaults>
</compile_context>

<pallas_src>
import functools

import jax
import jax.numpy as jnp
from jax.experimental import pallas as pl
from jax.experimental.pallas import tpu as pltpu


HIDDEN = 256
LANE = 128


def actor_kernel(x_ref, w1_ref, b1_ref, w2_ref, mask_ref, out_ref, *, a_real):
    # fc1 + ReLU.  x is cast to bf16 in-kernel (a couple of VPU converts hidden
    # under the W1 DMA); bf16 x bf16 on the MXU, f32 accumulation.
    h = jnp.dot(x_ref[...].astype(jnp.bfloat16), w1_ref[...],
                preferred_element_type=jnp.float32)
    h = jnp.maximum(h + b1_ref[...], 0.0)                 # f32 epilogue (B,256)

    # fc2 (bias-free) against the lane-padded W2 -> (B, A_pad), lane-dense.
    o = jnp.dot(h.astype(jnp.bfloat16), w2_ref[...],
                preferred_element_type=jnp.float32)

    # Global min/max over the REAL action columns only (padded columns are
    # exact zeros from zero weight columns and must not enter the reduction).
    col = jax.lax.broadcasted_iota(jnp.int32, o.shape, 1)
    valid = col < a_real
    o_min = jnp.min(jnp.where(valid, o, jnp.inf))
    o_max = jnp.max(jnp.where(valid, o, -jnp.inf))
    shift = o_min - o_max - 20.0

    # Mask inversion moved in-kernel (was a separate XLA fusion per call).
    inv = (1 - mask_ref[...]).astype(jnp.float32)          # (B, A)

    out_ref[...] = o                                       # lane-dense (B, A_pad) vst
    out_ref[:, :a_real] = o[:, :a_real] + shift * inv      # fix up real columns


def prepare_actor_params(w1, b1, w2):
    """One-time parameter prep (do this at init, NOT per call):
    bf16 MXU weights and zero lane-padding of W2 to a 128-lane multiple."""
    H, A = w2.shape
    A_pad = max(LANE, pl.cdiv(A, LANE) * LANE)
    w1_b = w1.astype(jnp.bfloat16)                               # (256, 256) bf16
    b1_f = jnp.asarray(b1, jnp.float32).reshape(1, H)            # (1, 256) f32
    w2_pad = jnp.zeros((H, A_pad), jnp.bfloat16).at[:, :A].set(
        w2.astype(jnp.bfloat16))                                 # (256, A_pad) bf16
    return w1_b, b1_f, w2_pad


@functools.partial(jax.jit, static_argnames=("a_real",))
def _actor_call(x, mask, w1_b, b1_f, w2_pad, *, a_real):
    B, H = x.shape
    A_pad = w2_pad.shape[1]

    vmem = pl.BlockSpec(memory_space=pltpu.MemorySpace.VMEM)
    cost = pl.CostEstimate(
        flops=2 * B * H * (H + A_pad),
        transcendentals=0,
        bytes_accessed=(x.size * 4 + w1_b.size * 2 + b1_f.size * 4
                        + w2_pad.size * 2 + mask.size * 4 + B * A_pad * 4),
    )

    out_pad = pl.pallas_call(
        functools.partial(actor_kernel, a_real=a_real),
        out_shape=jax.ShapeDtypeStruct((B, A_pad), jnp.float32),
        in_specs=[vmem, vmem, vmem, vmem, vmem],
        out_specs=vmem,
        cost_estimate=cost,
    )(x, w1_b, b1_f, w2_pad, mask)

    # Lane-dense (B, A_pad) store inside the kernel; slice real columns outside.
    return out_pad[:, :a_real]


def actor_forward(x, mask, params):
    """x:(B,256) f32, mask:(B,A) int32, params from prepare_actor_params."""
    w1_b, b1_f, w2_pad = params
    return _actor_call(x, mask, w1_b, b1_f, w2_pad, a_real=mask.shape[1])


def _uniform(key, shape, bound):
    return jax.random.uniform(key, shape, jnp.float32, minval=-bound, maxval=bound)


if __name__ == "__main__":
    B = 8            # batch
    A = 16           # np.prod(action_shape[1:])

    key = jax.random.PRNGKey(0)
    k_x, k_w1, k_b1, k_w2, k_m = jax.random.split(key, 5)

    bound1 = 1.0 / jnp.sqrt(jnp.float32(HIDDEN))
    x = jax.random.normal(k_x, (B, HIDDEN), jnp.float32)
    w1 = _uniform(k_w1, (HIDDEN, HIDDEN), bound1)      # [in, out]
    b1 = _uniform(k_b1, (1, HIDDEN), bound1)
    w2 = _uniform(k_w2, (HIDDEN, A), bound1)           # [in, out], no bias
    mask = (jax.random.uniform(k_m, (B, A)) > 0.3).astype(jnp.int32)

    # One-time parameter prep (hoisted out of the per-call path).
    params = prepare_actor_params(w1, b1, w2)
    params = jax.block_until_ready(params)

    logits = actor_forward(x, mask, params)
    jax.block_until_ready(logits)

    # Pure-JAX reference on the same bf16-rounded MXU operands (f32 accumulate).
    x_r = x.astype(jnp.bfloat16).astype(jnp.float32)
    w1_r = w1.astype(jnp.bfloat16).astype(jnp.float32)
    w2_r = w2.astype(jnp.bfloat16).astype(jnp.float32)
    h_ref = jnp.maximum(x_r @ w1_r + b1, 0.0)
    o_ref = h_ref.astype(jnp.bfloat16).astype(jnp.float32) @ w2_r
    ref = o_ref + (o_ref.min() - o_ref.max() - 20.0) * (1.0 - mask.astype(jnp.float32))
    assert logits.shape == (B, A)
    assert jnp.allclose(logits, ref, atol=2e-3, rtol=2e-3), "mismatch vs reference"

    print("KERNEL_OK")
</pallas_src>

<mosaic_0001>
module attributes {stable_mosaic.version = 11 : i64} {
  func.func @actor_kernel(%arg0: memref<8x256xf32, #tpu.memory_space<vmem>>, %arg1: memref<256x256xbf16, #tpu.memory_space<vmem>>, %arg2: memref<1x256xf32, #tpu.memory_space<vmem>>, %arg3: memref<256x128xbf16, #tpu.memory_space<vmem>>, %arg4: memref<8x16xi32, #tpu.memory_space<vmem>>, %arg5: memref<8x128xf32, #tpu.memory_space<vmem>>) attributes {dimension_semantics = [], scalar_prefetch = 0 : i64, scratch_operands = 0 : i64, tpu.core_type = #tpu.core_type<tc>} {
    %c0 = arith.constant 0 : index
    %c0_0 = arith.constant 0 : index
    %0 = vector.load %arg0[%c0, %c0_0] : memref<8x256xf32, #tpu.memory_space<vmem>>, vector<8x256xf32>
    %1 = arith.truncf %0 : vector<8x256xf32> to vector<8x256xbf16>
    %c0_1 = arith.constant 0 : index
    %c0_2 = arith.constant 0 : index
    %2 = vector.load %arg1[%c0_1, %c0_2] : memref<256x256xbf16, #tpu.memory_space<vmem>>, vector<256x256xbf16>
    %cst = arith.constant dense<0.000000e+00> : vector<8x256xf32>
    %3 = tpu.matmul %1, %2, %cst {dimension_numbers = #tpu.dot_dimension_numbers<[1], [0], [0], [1], [0, 0, 1, 1], [], []>} : vector<8x256xbf16>, vector<256x256xbf16>, vector<8x256xf32> -> vector<8x256xf32>
    %c0_3 = arith.constant 0 : index
    %c0_4 = arith.constant 0 : index
    %4 = vector.load %arg2[%c0_3, %c0_4] : memref<1x256xf32, #tpu.memory_space<vmem>>, vector<1x256xf32>
    %5 = vector.broadcast %4 : vector<1x256xf32> to vector<8x256xf32>
    %6 = arith.addf %3, %5 : vector<8x256xf32>
    %cst_5 = arith.constant 0.000000e+00 : f32
    %7 = vector.broadcast %cst_5 : f32 to vector<8x256xf32>
    %8 = arith.maximumf %6, %7 : vector<8x256xf32>
    %9 = arith.truncf %8 : vector<8x256xf32> to vector<8x256xbf16>
    %c0_6 = arith.constant 0 : index
    %c0_7 = arith.constant 0 : index
    %10 = vector.load %arg3[%c0_6, %c0_7] : memref<256x128xbf16, #tpu.memory_space<vmem>>, vector<256x128xbf16>
    %cst_8 = arith.constant dense<0.000000e+00> : vector<8x128xf32>
    %11 = tpu.matmul %9, %10, %cst_8 {dimension_numbers = #tpu.dot_dimension_numbers<[1], [0], [0], [1], [0, 0, 1, 1], [], []>} : vector<8x256xbf16>, vector<256x128xbf16>, vector<8x128xf32> -> vector<8x128xf32>
    %12 = tpu.iota {dimensions = array<i32: 1>} : vector<8x128xi32>
    %c16_i32 = arith.constant 16 : i32
    %13 = vector.broadcast %c16_i32 : i32 to vector<8x128xi32>
    %14 = arith.cmpi slt, %12, %13 : vector<8x128xi32>
    %cst_9 = arith.constant 0x7F800000 : f32
    %15 = vector.broadcast %cst_9 : f32 to vector<8x128xf32>
    %16 = arith.select %14, %11, %15 : vector<8x128xi1>, vector<8x128xf32>
    %17 = vector.shape_cast %16 : vector<8x128xf32> to vector<1x8x128xf32>
    %cst_10 = arith.constant dense<0x7F800000> : vector<1xf32>
    %18 = vector.multi_reduction <minimumf>, %17, %cst_10 [1, 2] : vector<1x8x128xf32> to vector<1xf32>
    %19 = vector.shape_cast %18 : vector<1xf32> to vector<1x1x1xf32>
    %20 = vector.extract %19[0, 0, 0] : f32 from vector<1x1x1xf32>
    %cst_11 = arith.constant 0xFF800000 : f32
    %21 = vector.broadcast %cst_11 : f32 to vector<8x128xf32>
    %22 = arith.select %14, %11, %21 : vector<8x128xi1>, vector<8x128xf32>
    %23 = vector.shape_cast %22 : vector<8x128xf32> to vector<1x8x128xf32>
    %cst_12 = arith.constant dense<0xFF800000> : vector<1xf32>
    %24 = vector.multi_reduction <maximumf>, %23, %cst_12 [1, 2] : vector<1x8x128xf32> to vector<1xf32>
    %25 = vector.shape_cast %24 : vector<1xf32> to vector<1x1x1xf32>
    %26 = vector.extract %25[0, 0, 0] : f32 from vector<1x1x1xf32>
    %27 = arith.subf %20, %26 : f32
    %cst_13 = arith.constant 2.000000e+01 : f32
    %28 = arith.subf %27, %cst_13 : f32
    %c0_14 = arith.constant 0 : index
    %c0_15 = arith.constant 0 : index
    %29 = vector.load %arg4[%c0_14, %c0_15] : memref<8x16xi32, #tpu.memory_space<vmem>>, vector<8x16xi32>
    %c1_i32 = arith.constant 1 : i32
    %30 = vector.broadcast %c1_i32 : i32 to vector<8x16xi32>
    %31 = arith.subi %30, %29 : vector<8x16xi32>
    %32 = arith.sitofp %31 : vector<8x16xi32> to vector<8x16xf32>
    %c0_16 = arith.constant 0 : index
    %c0_17 = arith.constant 0 : index
    %33 = vector.load %arg5[%c0_16, %c0_17] : memref<8x128xf32, #tpu.memory_space<vmem>>, vector<8x128xf32>
    tpu.vector_store %arg5[%c0_16, %c0_17], %11 {strides = array<i32>} : memref<8x128xf32, #tpu.memory_space<vmem>>, vector<8x128xf32>,
    %34 = vector.extract_strided_slice %11 {offsets = [0, 0], sizes = [8, 16], strides = [1, 1]} : vector<8x128xf32> to vector<8x16xf32>
    %35 = vector.broadcast %28 : f32 to vector<8x16xf32>
    %36 = arith.mulf %35, %32 : vector<8x16xf32>
    %37 = arith.addf %34, %36 : vector<8x16xf32>
    %c0_18 = arith.constant 0 : index
    %c0_19 = arith.constant 0 : index
    %38 = vector.load %arg5[%c0_18, %c0_19] : memref<8x128xf32, #tpu.memory_space<vmem>>, vector<8x16xf32>
    tpu.vector_store %arg5[%c0_18, %c0_19], %37 {strides = array<i32>} : memref<8x128xf32, #tpu.memory_space<vmem>>, vector<8x16xf32>,
    return
  }
}

</mosaic_0001>

<bundles_post_ra>
// kernel: _actor_call.1
= control target key start
LH: loop header
LB: loop body
LE: loop exit
PB: predicated region body
PF: predicated region fallthrough
CT: control target
= control target key end

     0   :  { %10 = vsyncpa [#allocation3], 0  ;;  %s913_s0 = inlined_call_operand.hbm [shape: f32[8,256], index: 0, kind: input, shape index: {}]   ;;  %s914_s1 = inlined_call_operand.hbm [shape: bf16[256,256], index: 1, kind: input, shape index: {}]   ;;  %s915_s2 = inlined_call_operand.vmem [shape: f32[1,256], index: 2, kind: input, shape index: {}]   ;;  %s916_s3 = inlined_call_operand.hbm [shape: bf16[256,128], index: 3, kind: input, shape index: {}]   ;;  %s917_s4 = inlined_call_operand.hbm [shape: s32[8,16], index: 4, kind: input, shape index: {}]   ;;  %s918_s5 = inlined_call_operand.hbm [shape: f32[8,128], index: 5, kind: output, shape index: {}]  }
   0x1   :  { %11 = vsyncpa [#allocation6], 0 }
   0x2   :  { %12 = vsyncpa [#allocation9], 0 }
   0x3   :  { %13 = vsyncpa [#allocation4], 0  ;;  %s811_s18 = smov [#allocation5]   ;;  %s693_s22 = scalar_lea.hbm %s914_s1, 4096 }
   0x4   :  { %s29_s19 = sshll.u32 %s811_s18, 4  ;;  %p694_p0 = scmp.ne.s32.totalorder %s914_s1, %s693_s22  ;;  %s30_s19 = int_to_ptr.vmem [resolvable:$true] %s29_s19 }
   0x5   :  { %p697_p1 = scmp.lt.u32.totalorder %s693_s22, %s914_s1 }
   0x7   :  { %p699_p2 = pnand %p697_p1, %p694_p0 }
   0x9   :  { %702 = shalt.err (!%p699_p2)
}
   0xa   :  { %s703_s27 = scalar_lea.vmem %s30_s19, 4096  ;;  %p708_p4 = scmp.lt.s32.totalorder %s30_s19, %s30_s19 }
   0xb   :  { %p704_p3 = scmp.ne.s32.totalorder %s30_s19, %s703_s27  ;;  %p709_p5 = scmp.lt.s32.totalorder %s703_s27, %s703_s27 }
   0xd   :  { %p710_p6 = por %p709_p5, %p708_p4 }
   0xf   :  { %p711_p7 = pnand %p710_p6, %p704_p3 }
  0x11   :  { %714 = shalt.err (!%p711_p7)
}
  0x12   :  { %s812_s28 = smov 128   ;;  %s813_s29 = smov 8  }
  0x13   :  { %35 = dma.hbm_to_vmem [thread:$0]  %s914_s1, 4096, %s30_s19, [#allocation6], %s812_s28, %s812_s28, %s813_s29  }
  0x14   :  { %s814_s7 = smov [#allocation2]   ;;  %s815_s9 = smov [#allocation7]  }
  0x15   :  { %s20_s8 = sshll.u32 %s814_s7, 4  ;;  %s43_s10 = sshll.u32 %s815_s9, 4  ;;  %s21_s8 = int_to_ptr.vmem [resolvable:$true] %s20_s8  ;;  %s44_s10 = int_to_ptr.vmem [resolvable:$true] %s43_s10 }
  0x16   :  { %s715_s13 = scalar_lea.hbm %s913_s0, 256 }
  0x17   :  { %p716_p8 = scmp.ne.s32.totalorder %s913_s0, %s715_s13  ;;  %p719_p9 = scmp.lt.u32.totalorder %s715_s13, %s913_s0 }
  0x19   :  { %p721_p10 = pnand %p719_p9, %p716_p8 }
  0x1b   :  { %724 = shalt.err (!%p721_p10)
}
  0x1c   :  { %s725_s1 = scalar_lea.vmem %s21_s8, 256  ;;  %p730_p12 = scmp.lt.s32.totalorder %s21_s8, %s21_s8 }
  0x1d   :  { %p726_p11 = scmp.ne.s32.totalorder %s21_s8, %s725_s1  ;;  %p731_p13 = scmp.lt.s32.totalorder %s725_s1, %s725_s1 }
  0x1f   :  { %p732_p0 = por %p731_p13, %p730_p12 }
  0x21   :  { %p733_p1 = pnand %p732_p0, %p726_p11 }
  0x23   :  { %736 = shalt.err (!%p733_p1)
}
  0x24   :  { %23 = dma.hbm_to_vmem [thread:$0]  %s913_s0, 256, %s21_s8, [#allocation3]  }
  0x25   :  { %s737_s22 = scalar_lea.hbm %s916_s3, 2048 }
  0x26   :  { %p738_p2 = scmp.ne.s32.totalorder %s916_s3, %s737_s22  ;;  %p741_p3 = scmp.lt.u32.totalorder %s737_s22, %s916_s3 }
  0x28   :  { %p743_p4 = pnand %p741_p3, %p738_p2 }
  0x2a   :  { %746 = shalt.err (!%p743_p4)
}
  0x2b   :  { %s747_s27 = scalar_lea.vmem %s44_s10, 2048  ;;  %p752_p6 = scmp.lt.s32.totalorder %s44_s10, %s44_s10 }
  0x2c   :  { %p748_p5 = scmp.ne.s32.totalorder %s44_s10, %s747_s27  ;;  %p753_p7 = scmp.lt.s32.totalorder %s747_s27, %s747_s27 }
  0x2e   :  { %p754_p8 = por %p753_p7, %p752_p6 }
  0x30   :  { %p755_p9 = pnand %p754_p8, %p748_p5 }
  0x32   :  { %758 = shalt.err (!%p755_p9)
}
  0x33   :  { %s816_s0 = smov 64   ;;  %s817_s28 = smov 4  }
  0x34   :  { %49 = dma.hbm_to_vmem [thread:$0]  %s916_s3, 2048, %s44_s10, [#allocation6], %s816_s0, %s816_s0, %s817_s28  }
  0x35   :  { %s818_s6 = smov [#allocation8]   ;;  %s759_s11 = scalar_lea.hbm %s917_s4, 128 }
  0x36   :  { %s56_s7 = sshll.u32 %s818_s6, 4  ;;  %p760_p10 = scmp.ne.s32.totalorder %s917_s4, %s759_s11  ;;  %s57_s7 = int_to_ptr.vmem [resolvable:$true] %s56_s7 }
  0x37   :  { %p763_p11 = scmp.lt.u32.totalorder %s759_s11, %s917_s4 }
  0x39   :  { %p765_p12 = pnand %p763_p11, %p760_p10 }
  0x3b   :  { %768 = shalt.err (!%p765_p12)
}
  0x3c   :  { %s769_s16 = scalar_lea.vmem %s57_s7, 128  ;;  %p774_p0 = scmp.lt.s32.totalorder %s57_s7, %s57_s7 }
  0x3d   :  { %p770_p13 = scmp.ne.s32.totalorder %s57_s7, %s769_s16  ;;  %p775_p1 = scmp.lt.s32.totalorder %s769_s16, %s769_s16 }
  0x3f   :  { %p776_p2 = por %p775_p1, %p774_p0 }
  0x41   :  { %p777_p3 = pnand %p776_p2, %p770_p13 }
  0x43   :  { %780 = shalt.err (!%p777_p3)
}
  0x44   :  { %59 = dma.hbm_to_vmem [thread:$0]  %s917_s4, 128, %s57_s7, [#allocation9]  }
  0x45   :  { %803 = dma.done.wait [#allocation3], 256  }
  0x46   :  { %804 = vsyncadd [#allocation3], 4294967040 }
  0x47   :  { %805 = dma.done.wait [#allocation6], 6144  }
  0x48   :  { %806 = vsyncadd [#allocation6], 4294961152 }
  0x49   :  { %807 = dma.done.wait [#allocation9], 128  }
  0x4a   :  { %808 = vsyncadd [#allocation9], 4294967168  ;;  %v629_v0 = vld [vmem:[#allocation5 + $0x4] ss:$8 sps:$4 sm:$0xff]   ;;  %v631_v1 = vld [vmem:[#allocation5] ss:$8 sps:$4 sm:$0xff]   ;;  %v111_v52 = vlaneseq }
  0x4b   :  { %281 = vmatprep.subr.bf16.mxu0 %v629_v0  ;;  %v632_v2 = vld [vmem:[#allocation5 + $0x14] ss:$8 sps:$4 sm:$0xff]   ;;  %v634_v3 = vld [vmem:[#allocation5 + $0x10] ss:$8 sps:$4 sm:$0xff]   ;;  %v635_v4 = vld [vmem:[#allocation5 + $0x24] ss:$8 sps:$4 sm:$0xff]  }
  0x4c   :  { %282 = vmatpush1.bf16.msra.mxu0 %v631_v1  ;;  %v637_v5 = vld [vmem:[#allocation5 + $0x20] ss:$8 sps:$4 sm:$0xff]   ;;  %v638_v6 = vld [vmem:[#allocation5 + $0x34] ss:$8 sps:$4 sm:$0xff]   ;;  %v640_v7 = vld [vmem:[#allocation5 + $0x30] ss:$8 sps:$4 sm:$0xff]  }
  0x4d   :  { %283 = vmatprep.subr.bf16.mxu0 %v632_v2  ;;  %v641_v8 = vld [vmem:[#allocation5 + $0x44] ss:$8 sps:$4 sm:$0xff]   ;;  %v643_v9 = vld [vmem:[#allocation5 + $0x40] ss:$8 sps:$4 sm:$0xff]   ;;  %v644_v10 = vld [vmem:[#allocation5 + $0x54] ss:$8 sps:$4 sm:$0xff]  }
  0x4e   :  { %v646_v11 = vld [vmem:[#allocation5 + $0x50] ss:$8 sps:$4 sm:$0xff]   ;;  %v647_v12 = vld [vmem:[#allocation5 + $0x64] ss:$8 sps:$4 sm:$0xff]   ;;  %v649_v13 = vld [vmem:[#allocation5 + $0x60] ss:$8 sps:$4 sm:$0xff]  }
  0x4f   :  { %v74_v14 = vld [vmem:[#allocation2 + $0x8] sm:$0xff]  ;;  %v677_v17 = vld [vmem:[#allocation7 + $0x40] sm:$0xff]   ;;  %v679_v19 = vld [vmem:[#allocation7 + $0x48] sm:$0xff]   ;;  %v112_v53 = vshrl.u32 %v111_v52, 7  ;;  %s819_s20 = smov [#allocation10]   ;;  %vm526_vm1 = vcmask 130048  }
  0x50   :  { %284 = vmatpush1.bf16.msra.mxu0 %v634_v3  ;;  %v650_v15 = vld [vmem:[#allocation5 + $0x74] ss:$8 sps:$4 sm:$0xff]   ;;  %v76_v16 = vpack.c.bf16 %v74_v14, %v74_v14  ;;  %v678_v18 = vld [vmem:[#allocation7] sm:$0xff]   ;;  %v652_v20 = vld [vmem:[#allocation5 + $0x70] ss:$8 sps:$4 sm:$0xff]   ;;  %594 = vmatprep.subr.bf16.mxu1 %v677_v17  ;;  %s534_s21 = sshll.u32 %s819_s20, 4  ;;  %s535_s21 = int_to_ptr.vmem [resolvable:$true] %s534_s21 }
  0x51   :  { %285 = vmatprep.subr.bf16.mxu0 %v635_v4  ;;  %595 = vmatpush3.bf16.msra.mxu1 %v678_v18  ;;  %v680_v21 = vld [vmem:[#allocation7 + $0x8] sm:$0xff]   ;;  %v681_v22 = vld [vmem:[#allocation7 + $0x50] sm:$0xff]   ;;  %v683_v26 = vld [vmem:[#allocation7 + $0x58] sm:$0xff]   ;;  %v113_v54 = vsub.s32 0, %v112_v53  ;;  %v117_v56 = vsub.s32 1, %v112_v53  ;;  %s781_s22 = scalar_lea.vmem %s535_s21, 128  ;;  %p786_p5 = scmp.lt.s32.totalorder %s535_s21, %s535_s21 }
  0x52   :  { %313 = vmatprep.mubr.bf16.mxu0 %v76_v16  ;;  %596 = vmatprep.subr.bf16.mxu1 %v679_v19  ;;  %v653_v23 = vld [vmem:[#allocation5 + $0x84] ss:$8 sps:$4 sm:$0xff]   ;;  %v655_v24 = vld [vmem:[#allocation5 + $0x80] ss:$8 sps:$4 sm:$0xff]   ;;  %v682_v25 = vld [vmem:[#allocation7 + $0x10] sm:$0xff]   ;;  %p782_p4 = scmp.ne.s32.totalorder %s535_s21, %s781_s22  ;;  %p787_p6 = scmp.lt.s32.totalorder %s781_s22, %s781_s22 }
  0x53   :  { %v656_v27 = vld [vmem:[#allocation5 + $0x94] ss:$8 sps:$4 sm:$0xff]   ;;  %v658_v28 = vld [vmem:[#allocation5 + $0x90] ss:$8 sps:$4 sm:$0xff]   ;;  %v659_v30 = vld [vmem:[#allocation5 + $0xa4] ss:$8 sps:$4 sm:$0xff]  }
  0x54   :  { %286 = vmatpush1.bf16.msra.mxu0 %v637_v5  ;;  %v684_v29 = vld [vmem:[#allocation7 + $0x18] sm:$0xff]   ;;  %v685_v31 = vld [vmem:[#allocation7 + $0x60] sm:$0xff]   ;;  %v687_v34 = vld [vmem:[#allocation7 + $0x68] sm:$0xff]   ;;  %v495_v5 = vand.u32 127, %v111_v52  ;;  %p788_p7 = por %p787_p6, %p786_p5 }
  0x55   :  { %287 = vmatprep.subr.bf16.mxu0 %v638_v6  ;;  %597 = vmatpush3.bf16.msra.mxu1 %v680_v21  ;;  %v686_v32 = vld [vmem:[#allocation7 + $0x20] sm:$0xff]   ;;  %v662_v35 = vld [vmem:[#allocation5 + $0xb4] ss:$8 sps:$4 sm:$0xff]   ;;  %v688_v36 = vld [vmem:[#allocation7 + $0x28] sm:$0xff]  }
  0x56   :  { %598 = vmatprep.subr.bf16.mxu1 %v681_v22  ;;  %v661_v33 = vld [vmem:[#allocation5 + $0xa0] ss:$8 sps:$4 sm:$0xff]   ;;  %v664_v37 = vld [vmem:[#allocation5 + $0xb0] ss:$8 sps:$4 sm:$0xff]   ;;  %v665_v38 = vld [vmem:[#allocation5 + $0xc4] ss:$8 sps:$4 sm:$0xff]   ;;  %p789_p8 = pnand %p788_p7, %p782_p4 }
  0x57   :  { %v667_v39 = vld [vmem:[#allocation5 + $0xc0] ss:$8 sps:$4 sm:$0xff]   ;;  %v668_v40 = vld [vmem:[#allocation5 + $0xd4] ss:$8 sps:$4 sm:$0xff]   ;;  %v670_v41 = vld [vmem:[#allocation5 + $0xd0] ss:$8 sps:$4 sm:$0xff]  }
  0x58   :  { %288 = vmatpush1.bf16.msra.mxu0 %v640_v7  ;;  %v671_v42 = vld [vmem:[#allocation5 + $0xe4] ss:$8 sps:$4 sm:$0xff]   ;;  %v673_v43 = vld [vmem:[#allocation5 + $0xe0] ss:$8 sps:$4 sm:$0xff]   ;;  %v674_v44 = vld [vmem:[#allocation5 + $0xf4] ss:$8 sps:$4 sm:$0xff]  }
  0x59   :  { %289 = vmatprep.subr.bf16.mxu0 %v641_v8  ;;  %599 = vmatpush3.bf16.msra.mxu1 %v682_v25  ;;  %v676_v45 = vld [vmem:[#allocation5 + $0xf0] ss:$8 sps:$4 sm:$0xff]   ;;  %vm496_vm0 = vcmp.lt.s32.totalorder %v495_v5, 16 }
  0x5a   :  { %600 = vmatprep.subr.bf16.mxu1 %v683_v26  ;;  %v73_v46 = vld [vmem:[#allocation2] sm:$0xff]  ;;  %v691_v50 = vld [vmem:[#allocation7 + $0x78] sm:$0xff]  }
  0x5b   :  { %v75_v47 = vpack.c.bf16 %v73_v46, %v73_v46  ;;  %v689_v48 = vld [vmem:[#allocation7 + $0x70] sm:$0xff]   ;;  %v692_v51 = vld [vmem:[#allocation7 + $0x38] sm:$0xff]  }
  0x5c   :  { %290 = vmatpush1.bf16.msra.mxu0 %v643_v9  ;;  %v690_v49 = vld [vmem:[#allocation7 + $0x30] sm:$0xff]  }
  0x5d   :  { %291 = vmatprep.subr.bf16.mxu0 %v644_v10  ;;  %601 = vmatpush3.bf16.msra.mxu1 %v684_v29  ;;  %v109_v55 = vld [vmem:[%s915_s2] sm:$0x3] }
  0x5e   :  { %602 = vmatprep.subr.bf16.mxu1 %v685_v31  ;;  %v114_v57 = vrot.slane %v109_v55, %v113_v54  ;;  %v118_v58 = vrot.slane %v109_v55, %v117_v56 }
  0x60   :  { %292 = vmatpush1.bf16.msra.mxu0 %v646_v11 }
  0x61   :  { %293 = vmatprep.subr.bf16.mxu0 %v647_v12  ;;  %603 = vmatpush3.bf16.msra.mxu1 %v686_v32 }
  0x62   :  { %604 = vmatprep.subr.bf16.mxu1 %v687_v34 }
  0x64   :  { %294 = vmatpush1.bf16.msra.mxu0 %v649_v13 }
  0x65   :  { %295 = vmatprep.subr.bf16.mxu0 %v650_v15  ;;  %605 = vmatpush3.bf16.msra.mxu1 %v688_v36 }
  0x66   :  { %606 = vmatprep.subr.bf16.mxu1 %v689_v48 }
  0x68   :  { %296 = vmatpush1.bf16.msra.mxu0 %v652_v20 }
  0x69   :  { %297 = vmatprep.subr.bf16.mxu0 %v653_v23  ;;  %607 = vmatpush3.bf16.msra.mxu1 %v690_v49 }
  0x6a   :  { %608 = vmatprep.subr.bf16.mxu1 %v691_v50 }
  0x6c   :  { %298 = vmatpush1.bf16.msra.mxu0 %v655_v24 }
  0x6d   :  { %299 = vmatprep.subr.bf16.mxu0 %v656_v27  ;;  %609 = vmatpush3.bf16.msra.mxu1 %v692_v51  ;;  %v519_v27 = vld [vmem:[#allocation8] sm:$0xff] }
  0x70   :  { %300 = vmatpush1.bf16.msra.mxu0 %v658_v28  ;;  %v520_v28 = vsub.s32 1, %v519_v27 }
  0x71   :  { %301 = vmatprep.subr.bf16.mxu0 %v659_v30 }
  0x72   :  { %v521_v29 = vcvt.s32.f32 %v520_v28 }
  0x74   :  { %302 = vmatpush1.bf16.msra.mxu0 %v661_v33 }
  0x75   :  { %303 = vmatprep.subr.bf16.mxu0 %v662_v35 }
  0x78   :  { %304 = vmatpush1.bf16.msra.mxu0 %v664_v37 }
  0x79   :  { %305 = vmatprep.subr.bf16.mxu0 %v665_v38 }
  0x7c   :  { %306 = vmatpush1.bf16.msra.mxu0 %v667_v39 }
  0x7d   :  { %307 = vmatprep.subr.bf16.mxu0 %v668_v40 }
  0x80   :  { %308 = vmatpush1.bf16.msra.mxu0 %v670_v41 }
  0x81   :  { %309 = vmatprep.subr.bf16.mxu0 %v671_v42 }
  0x84   :  { %310 = vmatpush1.bf16.msra.mxu0 %v673_v43 }
  0x85   :  { %311 = vmatprep.subr.bf16.mxu0 %v674_v44 }
  0x88   :  { %312 = vmatpush1.bf16.msra.mxu0 %v676_v45 }
  0x8b   :  { %314 = vmatmul.mubr.bf16.vlgmr.msra.gmra.mrb[0].mxu0 %v75_v47 }
 0x15e   :  { %v315_v59 = vpop.f32.mrb[0].mxu0 }
 0x15f   :  { %v316_v60 = vadd.f32 %v315_v59, %v114_v57  ;;  %v317_v61 = vpop.f32.mrb[1].mxu0 }
 0x160   :  { %v318_v62 = vadd.f32 %v317_v61, %v118_v58  ;;  %v319_v63 = vpop.f32.mrb[2].mxu0 }
 0x161   :  { %v322_v0 = vmax.f32 %v316_v60, 0.0  ;;  %v320_v1 = vpop.f32.mrb[3].mxu0 }
 0x162   :  { %v323_v2 = vmax.f32 %v318_v62, 0.0 }
 0x163   :  { %v324_v4 = vpack.c.bf16 %v322_v0, %v322_v0 }
 0x164   :  { %v325_v3 = vpack.c.bf16 %v323_v2, %v323_v2 }
 0x166   :  { %486 = vmatprep.mubr.bf16.mxu1 %v325_v3 }
 0x167   :  { %487 = vmatmul.mubr.bf16.vlgmr.msra.gmra.mrb[0].mxu1 %v324_v4 }
 0x23a   :  { %v610_v6 = vpop.f32.mrb[0].mxu1 }
 0x23b   :  { %v611_v7 = vpop.f32.mrb[1].mxu1 }
 0x23c   :  { %v612_v8 = vadd.f32 %v611_v7, %v610_v6  ;;  %v613_v9 = vpop.f32.mrb[2].mxu1 }
 0x23d   :  { %v614_v10 = vpop.f32.mrb[3].mxu1 }
 0x23e   :  { %522 = vst [vmem:[#allocation10] sm:$0xff] %v612_v8  ;;  %v497_v11 = vsel %vm496_vm0, %v612_v8, inf  ;;  %v507_v12 = vsel %vm496_vm0, %v612_v8, -inf }
 0x23f   :  { %498 = vmin.xlane.f32.xlu0 %v497_v11 }
 0x243   :  { %508 = vmax.xlane.f32.xlu0 %v507_v12 }
 0x2cc   :  { %v499_v13 = vpop.xlane.xlu0 %498 }
 0x2cd   :  { %v500_v14 = vrot.slane %v499_v13, 4 }
 0x2cf   :  { %v501_v15 = vmin.f32 %v499_v13, %v500_v14 }
 0x2d0   :  { %v509_v16 = vpop.xlane.xlu0 %508 }
 0x2d1   :  { %v502_v17 = vrot.slane %v501_v15, 2  ;;  %v510_v18 = vrot.slane %v509_v16, 4 }
 0x2d3   :  { %v511_v19 = vmax.f32 %v509_v16, %v510_v18  ;;  %v503_v20 = vmin.f32 %v501_v15, %v502_v17 }
 0x2d5   :  { %v512_v21 = vrot.slane %v511_v19, 2  ;;  %v504_v22 = vrot.slane %v503_v20, 1 }
 0x2d7   :  { %v513_v23 = vmax.f32 %v511_v19, %v512_v21  ;;  %v505_v24 = vmin.f32 %v503_v20, %v504_v22 }
 0x2d9   :  { %616 = vpush %v505_v24  ;;  %v514_v25 = vrot.slane %v513_v23, 1 }
 0x2db   :  { %v515_v26 = vmax.f32 %v513_v23, %v514_v25 }
 0x2dd   :  { %618 = vpush %v515_v26 }
 0x30a   :  { %s617_s2 = spop %616 }
 0x30e   :  { %s619_s1 = spop %618 }
 0x30f   :  { %s517_s18 = ssub.f32 %s617_s2, %s619_s1 }
 0x311   :  { %s593_s19 = sadd.f32 -20.0, %s517_s18 }
 0x313   :  { %v523_v30 = vstv %s593_s19 }
 0x314   :  { %v524_v31 = vmul.f32 %v523_v30, %v521_v29 }
 0x316   :  { %v525_v32 = vadd.f32 %v612_v8, %v524_v31 }
 0x318   :  { %527 = vst.msk [vmem:[#allocation10] sm:$0xff] %vm526_vm1, %v525_v32 }
 0x319   :  { %792 = shalt.err (!%p789_p8)
}
 0x31a   :  { %s793_s25 = scalar_lea.hbm %s918_s5, 128 }
 0x31b   :  { %p794_p9 = scmp.ne.s32.totalorder %s918_s5, %s793_s25  ;;  %p797_p10 = scmp.lt.u32.totalorder %s793_s25, %s918_s5 }
 0x31d   :  { %p799_p11 = pnand %p797_p10, %p794_p9 }
 0x31f   :  { %802 = shalt.err (!%p799_p11)
}
 0x320   :  { %537 = dma.vmem_to_hbm [thread:$0]  %s535_s21, 128, %s918_s5, [#allocation4]  }
 0x321   :  { %809 = dma.done.wait [#allocation4], 128  }
 0x322   :  { %810 = vsyncadd [#allocation4], 4294967168 }
 0x323   :  { %541 = vsyncpa [#allocation3], 1 }
 0x324   :  { %542 = vsyncpa [#allocation6], 1 }
 0x325   :  { %543 = vsyncpa [#allocation9], 1 }
 0x326   :  { %544 = vsyncpa [#allocation4], 1 }

</bundles_post_ra>
